<compile_context>
chip_gen: v7x
topology: tpu7x:2x2x1
jax: 0.10.0
libtpu: 0.0.40
codegen_flags: <defaults>
</compile_context>

<pallas_src>
import functools

import jax
import jax.numpy as jnp
from jax import lax
from jax.experimental import pallas as pl
from jax.experimental.pallas import tpu as pltpu


def _ffn_kernel(x_ref, w1_ref, b1_ref, w2_ref, b2_ref, o_ref, acc_ref):
    # x_ref  : (tm, d_model)  activations tile (resident across f)
    # w1_ref : (tf, d_model)  W1 tile, PyTorch (out, in) layout
    # b1_ref : (1,  tf)       bias-1 slice
    # w2_ref : (d_model, tf)  W2 tile, PyTorch (out, in) layout
    # b2_ref : (1,  d_model)  bias-2 row
    # o_ref  : (tm, d_model)  output tile (resident across f)
    # acc_ref: (tm, d_model)  f32 accumulator scratch
    f = pl.program_id(1)

    @pl.when(f == 0)
    def _():
        acc_ref[...] = jnp.zeros_like(acc_ref)

    # First linear on this d_ff slice: contract the shared in_features dim
    # (x axis 1  vs  W1 axis 1) -> (tm, tf), accumulate in f32 on the MXU.
    h = lax.dot_general(
        x_ref[...],
        w1_ref[...],
        dimension_numbers=(((1,), (1,)), ((), ())),
        preferred_element_type=jnp.float32,
    )
    h = jnp.maximum(h + b1_ref[...].astype(jnp.float32), 0.0)

    # Second linear partial sum: (tm, tf) x (d_model, tf) -> (tm, d_model).
    # TODO(synk): training-mode dropout (pltpu.prng_* stochastic mask on h)
    # not implemented; eval-mode dropout is the identity, used here.
    acc_ref[...] += lax.dot_general(
        h.astype(x_ref.dtype),
        w2_ref[...],
        dimension_numbers=(((1,), (1,)), ((), ())),
        preferred_element_type=jnp.float32,
    )

    @pl.when(f == pl.num_programs(1) - 1)
    def _():
        out = acc_ref[...] + b2_ref[...].astype(jnp.float32)
        o_ref[...] = out.astype(o_ref.dtype)


def _pick_tile(dim, target, step):
    """Largest tile <= target (multiple of `step`) that divides dim, else full dim."""
    if dim <= target:
        return dim
    t = (target // step) * step
    while t >= step:
        if dim % t == 0:
            return t
        t -= step
    return dim


def positionwise_feed_forward(x, w1, b1, w2, b2, *,
                              tm_target=256, tf_target=512):
    """x: (batch, seq, d_model); w1: (d_ff, d_model); w2: (d_model, d_ff)."""
    batch, seq, d_model = x.shape
    d_ff = w1.shape[0]
    M = batch * seq
    x2d = x.reshape(M, d_model)

    tm = _pick_tile(M, tm_target, step=8)      # sublane-aligned M tile
    tf = _pick_tile(d_ff, tf_target, step=128)  # lane-aligned d_ff tile
    grid = (M // tm, d_ff // tf)

    b1r = b1.reshape(1, d_ff)
    b2r = b2.reshape(1, d_model)

    itemsize = jnp.dtype(x.dtype).itemsize
    cost = pl.CostEstimate(
        flops=4 * M * d_model * d_ff,           # two matmuls
        transcendentals=0,
        bytes_accessed=(M * d_model * 2         # x in, y out
                        + 2 * d_ff * d_model    # W1, W2
                        + d_ff + d_model) * itemsize,
    )

    y2d = pl.pallas_call(
        _ffn_kernel,
        out_shape=jax.ShapeDtypeStruct((M, d_model), x.dtype),
        grid_spec=pltpu.PrefetchScalarGridSpec(
            num_scalar_prefetch=0,
            grid=grid,
            in_specs=[
                pl.BlockSpec((tm, d_model), lambda i, f: (i, 0)),   # x tile
                pl.BlockSpec((tf, d_model), lambda i, f: (f, 0)),   # W1 tile
                pl.BlockSpec((1, tf), lambda i, f: (0, f)),         # b1 slice
                pl.BlockSpec((d_model, tf), lambda i, f: (0, f)),   # W2 tile
                pl.BlockSpec((1, d_model), lambda i, f: (0, 0)),    # b2 row
            ],
            out_specs=pl.BlockSpec((tm, d_model), lambda i, f: (i, 0)),
            scratch_shapes=[pltpu.VMEM((tm, d_model), jnp.float32)],
        ),
        compiler_params=pltpu.CompilerParams(
            dimension_semantics=("parallel", "arbitrary"),
            vmem_limit_bytes=64 * 1024 * 1024,
        ),
        cost_estimate=cost,
    )(x2d, w1, b1r, w2, b2r)

    return y2d.reshape(batch, seq, d_model)


if __name__ == "__main__":
    # Small shapes consistent with the module (lane-dense dims).
    batch, seq, d_model, d_ff = 2, 8, 128, 512

    key = jax.random.PRNGKey(0)
    kx, kw1, kb1, kw2, kb2 = jax.random.split(key, 5)

    x = jax.random.normal(kx, (batch, seq, d_model), dtype=jnp.float32)

    # nn.Linear-style uniform init, PyTorch (out_features, in_features) layout.
    bound1 = 1.0 / jnp.sqrt(jnp.float32(d_model))
    w1 = jax.random.uniform(kw1, (d_ff, d_model), dtype=jnp.float32,
                            minval=-bound1, maxval=bound1)
    b1 = jax.random.uniform(kb1, (d_ff,), dtype=jnp.float32,
                            minval=-bound1, maxval=bound1)

    bound2 = 1.0 / jnp.sqrt(jnp.float32(d_ff))
    w2 = jax.random.uniform(kw2, (d_model, d_ff), dtype=jnp.float32,
                            minval=-bound2, maxval=bound2)
    b2 = jax.random.uniform(kb2, (d_model,), dtype=jnp.float32,
                            minval=-bound2, maxval=bound2)

    out = positionwise_feed_forward(x, w1, b1, w2, b2)
    out = jax.block_until_ready(out)

    # Pure-JAX reference (eval-mode dropout == identity).
    x2d = x.reshape(batch * seq, d_model)
    h_ref = jnp.maximum(x2d @ w1.T + b1, 0.0)
    y_ref = (h_ref @ w2.T + b2).reshape(batch, seq, d_model)

    assert out.shape == (batch, seq, d_model)
    assert jnp.allclose(out, y_ref, atol=1e-4, rtol=1e-4), (
        float(jnp.max(jnp.abs(out - y_ref))))

    print("KERNEL_OK")
</pallas_src>

<mosaic_0001>
module attributes {stable_mosaic.version = 11 : i64} {
  func.func @_ffn_kernel(%arg0: i32, %arg1: i32, %arg2: memref<16x128xf32, #tpu.memory_space<vmem>>, %arg3: memref<512x128xf32, #tpu.memory_space<vmem>>, %arg4: memref<1x512xf32, #tpu.memory_space<vmem>>, %arg5: memref<128x512xf32, #tpu.memory_space<vmem>>, %arg6: memref<1x128xf32, #tpu.memory_space<vmem>>, %arg7: memref<16x128xf32, #tpu.memory_space<vmem>>, %arg8: memref<16x128xf32, #tpu.memory_space<vmem>>) attributes {dimension_semantics = [#tpu.dimension_semantics<parallel>, #tpu.dimension_semantics<arbitrary>], iteration_bounds = array<i64: 1, 1>, scalar_prefetch = 0 : i64, scratch_operands = 1 : i64, tpu.core_type = #tpu.core_type<tc>, window_params = [{transform_indices = @transform_0, window_bounds = array<i64: 16, 128>}, {transform_indices = @transform_1, window_bounds = array<i64: 512, 128>}, {transform_indices = @transform_2, window_bounds = array<i64: 1, 512>}, {transform_indices = @transform_3, window_bounds = array<i64: 128, 512>}, {pipeline_mode = #tpu.pipeline_mode<synchronous>, transform_indices = @transform_4, window_bounds = array<i64: 1, 128>}, {transform_indices = @transform_5, window_bounds = array<i64: 16, 128>}]} {
    %c0_i32 = arith.constant 0 : i32
    %0 = arith.cmpi eq, %arg1, %c0_i32 : i32
    %1 = arith.extui %0 : i1 to i32
    %c0_i32_0 = arith.constant 0 : i32
    %2 = arith.cmpi ne, %1, %c0_i32_0 : i32
    scf.if %2 {
      %cst_16 = arith.constant 0.000000e+00 : f32
      %19 = vector.broadcast %cst_16 : f32 to vector<16x128xf32>
      %c0_17 = arith.constant 0 : index
      %c0_18 = arith.constant 0 : index
      %20 = vector.load %arg8[%c0_17, %c0_18] : memref<16x128xf32, #tpu.memory_space<vmem>>, vector<16x128xf32>
      tpu.vector_store %arg8[%c0_17, %c0_18], %19 {strides = array<i32>} : memref<16x128xf32, #tpu.memory_space<vmem>>, vector<16x128xf32>,
    } else {
    }
    %c0 = arith.constant 0 : index
    %c0_1 = arith.constant 0 : index
    %3 = vector.load %arg2[%c0, %c0_1] : memref<16x128xf32, #tpu.memory_space<vmem>>, vector<16x128xf32>
    %c0_2 = arith.constant 0 : index
    %c0_3 = arith.constant 0 : index
    %4 = vector.load %arg3[%c0_2, %c0_3] : memref<512x128xf32, #tpu.memory_space<vmem>>, vector<512x128xf32>
    %cst = arith.constant dense<0.000000e+00> : vector<16x512xf32>
    %5 = tpu.matmul %3, %4, %cst {dimension_numbers = #tpu.dot_dimension_numbers<[1], [1], [0], [0], [0, 0, 1, 0], [], []>} : vector<16x128xf32>, vector<512x128xf32>, vector<16x512xf32> -> vector<16x512xf32>
    %c0_4 = arith.constant 0 : index
    %c0_5 = arith.constant 0 : index
    %6 = vector.load %arg4[%c0_4, %c0_5] : memref<1x512xf32, #tpu.memory_space<vmem>>, vector<1x512xf32>
    %7 = vector.broadcast %6 : vector<1x512xf32> to vector<16x512xf32>
    %8 = arith.addf %5, %7 : vector<16x512xf32>
    %cst_6 = arith.constant 0.000000e+00 : f32
    %9 = vector.broadcast %cst_6 : f32 to vector<16x512xf32>
    %10 = arith.maximumf %8, %9 : vector<16x512xf32>
    %c0_7 = arith.constant 0 : index
    %c0_8 = arith.constant 0 : index
    %11 = vector.load %arg8[%c0_7, %c0_8] : memref<16x128xf32, #tpu.memory_space<vmem>>, vector<16x128xf32>
    %c0_9 = arith.constant 0 : index
    %c0_10 = arith.constant 0 : index
    %12 = vector.load %arg5[%c0_9, %c0_10] : memref<128x512xf32, #tpu.memory_space<vmem>>, vector<128x512xf32>
    %cst_11 = arith.constant dense<0.000000e+00> : vector<16x128xf32>
    %13 = tpu.matmul %10, %12, %cst_11 {dimension_numbers = #tpu.dot_dimension_numbers<[1], [1], [0], [0], [0, 0, 1, 0], [], []>} : vector<16x512xf32>, vector<128x512xf32>, vector<16x128xf32> -> vector<16x128xf32>
    %14 = arith.addf %11, %13 : vector<16x128xf32>
    %c0_12 = arith.constant 0 : index
    %c0_13 = arith.constant 0 : index
    %15 = vector.load %arg8[%c0_12, %c0_13] : memref<16x128xf32, #tpu.memory_space<vmem>>, vector<16x128xf32>
    tpu.vector_store %arg8[%c0_12, %c0_13], %14 {strides = array<i32>} : memref<16x128xf32, #tpu.memory_space<vmem>>, vector<16x128xf32>,
    %c0_i32_14 = arith.constant 0 : i32
    %16 = arith.cmpi eq, %arg1, %c0_i32_14 : i32
    %17 = arith.extui %16 : i1 to i32
    %c0_i32_15 = arith.constant 0 : i32
    %18 = arith.cmpi ne, %17, %c0_i32_15 : i32
    scf.if %18 {
      %c0_16 = arith.constant 0 : index
      %c0_17 = arith.constant 0 : index
      %19 = vector.load %arg8[%c0_16, %c0_17] : memref<16x128xf32, #tpu.memory_space<vmem>>, vector<16x128xf32>
      %c0_18 = arith.constant 0 : index
      %c0_19 = arith.constant 0 : index
      %20 = vector.load %arg6[%c0_18, %c0_19] : memref<1x128xf32, #tpu.memory_space<vmem>>, vector<1x128xf32>
      %21 = vector.broadcast %20 : vector<1x128xf32> to vector<16x128xf32>
      %22 = arith.addf %19, %21 : vector<16x128xf32>
      %c0_20 = arith.constant 0 : index
      %c0_21 = arith.constant 0 : index
      %23 = vector.load %arg7[%c0_20, %c0_21] : memref<16x128xf32, #tpu.memory_space<vmem>>, vector<16x128xf32>
      tpu.vector_store %arg7[%c0_20, %c0_21], %22 {strides = array<i32>} : memref<16x128xf32, #tpu.memory_space<vmem>>, vector<16x128xf32>,
    } else {
    }
    return
  }
  func.func @transform_0(%arg0: i32, %arg1: i32) -> (i32, i32) {
    %c0_i32 = arith.constant 0 : i32
    %c0_i32_0 = arith.constant 0 : i32
    return %arg0, %c0_i32 : i32, i32
  }
  func.func @transform_1(%arg0: i32, %arg1: i32) -> (i32, i32) {
    %c0_i32 = arith.constant 0 : i32
    %c0_i32_0 = arith.constant 0 : i32
    return %arg1, %c0_i32 : i32, i32
  }
  func.func @transform_2(%arg0: i32, %arg1: i32) -> (i32, i32) {
    %c0_i32 = arith.constant 0 : i32
    %c0_i32_0 = arith.constant 0 : i32
    return %c0_i32, %arg1 : i32, i32
  }
  func.func @transform_3(%arg0: i32, %arg1: i32) -> (i32, i32) {
    %c0_i32 = arith.constant 0 : i32
    %c0_i32_0 = arith.constant 0 : i32
    return %c0_i32, %arg1 : i32, i32
  }
  func.func @transform_4(%arg0: i32, %arg1: i32) -> (i32, i32) {
    %c0_i32 = arith.constant 0 : i32
    %c0_i32_0 = arith.constant 0 : i32
    %c0_i32_1 = arith.constant 0 : i32
    return %c0_i32, %c0_i32_0 : i32, i32
  }
  func.func @transform_5(%arg0: i32, %arg1: i32) -> (i32, i32) {
    %c0_i32 = arith.constant 0 : i32
    %c0_i32_0 = arith.constant 0 : i32
    return %arg0, %c0_i32 : i32, i32
  }
}

</mosaic_0001>

<bundles_post_ra>
// kernel: tpu_custom_call.1
= control target key start
LH: loop header
LB: loop body
LE: loop exit
PB: predicated region body
PF: predicated region fallthrough
CT: control target
= control target key end

     0   :  { %10 = vsyncpa [#allocation4], 0  ;;  %s1081_s0 = inlined_call_operand.hbm [shape: f32[16,128], index: 0, kind: input, shape index: {}]   ;;  %s1082_s1 = inlined_call_operand.hbm [shape: f32[512,128], index: 1, kind: input, shape index: {}]   ;;  %s1083_s2 = inlined_call_operand.hbm [shape: f32[1,512], index: 2, kind: input, shape index: {}]   ;;  %s1084_s3 = inlined_call_operand.hbm [shape: f32[128,512], index: 3, kind: input, shape index: {}]   ;;  %s1085_s4 = inlined_call_operand.hbm [shape: f32[1,128], index: 4, kind: input, shape index: {}]   ;;  %s1086_s5 = inlined_call_operand.hbm [shape: f32[16,128], index: 5, kind: output, shape index: {}]  }
   0x1   :  { %11 = vsyncpa [#allocation7], 0 }
   0x2   :  { %12 = vsyncpa [#allocation10], 0 }
   0x3   :  { %13 = vsyncpa [#allocation5], 0  ;;  %s947_s18 = smov [#allocation6]   ;;  %s948_s20 = smov [#allocation9]  }
   0x4   :  { %s31_s19 = sshll.u32 %s947_s18, 4  ;;  %s53_s21 = sshll.u32 %s948_s20, 4  ;;  %s32_s19 = int_to_ptr.vmem [resolvable:$true] %s31_s19  ;;  %s987_s21 = int_to_ptr.vmem [resolvable:$true] %s53_s21 }
   0x5   :  { %s807_s24 = scalar_lea.hbm %s1082_s1, 8192 }
   0x6   :  { %p808_p0 = scmp.ne.s32.totalorder %s1082_s1, %s807_s24  ;;  %p811_p1 = scmp.lt.u32.totalorder %s807_s24, %s1082_s1 }
   0x8   :  { %p813_p2 = pnand %p811_p1, %p808_p0 }
   0xa   :  { %816 = shalt.err (!%p813_p2)
}
   0xb   :  { %s817_s29 = scalar_lea.vmem %s32_s19, 8192  ;;  %p822_p4 = scmp.lt.s32.totalorder %s32_s19, %s32_s19 }
   0xc   :  { %p818_p3 = scmp.ne.s32.totalorder %s32_s19, %s817_s29  ;;  %p823_p5 = scmp.lt.s32.totalorder %s817_s29, %s817_s29 }
   0xe   :  { %p824_p6 = por %p823_p5, %p822_p4 }
  0x10   :  { %p825_p7 = pnand %p824_p6, %p818_p3 }
  0x12   :  { %828 = shalt.err (!%p825_p7)
}
  0x13   :  { %s949_s30 = smov 128   ;;  %s950_s6 = smov 8  }
  0x14   :  { %37 = dma.hbm_to_vmem [thread:$0]  %s1082_s1, 8192, %s32_s19, [#allocation7], %s949_s30, %s949_s30, %s950_s6  }
  0x15   :  { %s829_s11 = scalar_lea.hbm %s1084_s3, 8192 }
  0x16   :  { %p830_p8 = scmp.ne.s32.totalorder %s1084_s3, %s829_s11  ;;  %p833_p9 = scmp.lt.u32.totalorder %s829_s11, %s1084_s3 }
  0x18   :  { %p835_p10 = pnand %p833_p9, %p830_p8 }
  0x1a   :  { %838 = shalt.err (!%p835_p10)
}
  0x1b   :  { %s839_s16 = scalar_lea.vmem %s987_s21, 8192  ;;  %p844_p12 = scmp.lt.s32.totalorder %s987_s21, %s987_s21 }
  0x1c   :  { %p840_p11 = scmp.ne.s32.totalorder %s987_s21, %s839_s16  ;;  %p845_p13 = scmp.lt.s32.totalorder %s839_s16, %s839_s16 }
  0x1e   :  { %p846_p0 = por %p845_p13, %p844_p12 }
  0x20   :  { %p847_p1 = pnand %p846_p0, %p840_p11 }
  0x22   :  { %850 = shalt.err (!%p847_p1)
}
  0x23   :  { %s951_s1 = smov 512   ;;  %s952_s17 = smov 32  }
  0x24   :  { %59 = dma.hbm_to_vmem [thread:$0]  %s1084_s3, 8192, %s987_s21, [#allocation10], %s951_s1, %s951_s1, %s952_s17  }
  0x25   :  { %s953_s20 = smov [#allocation3]   ;;  %s954_s23 = smov [#allocation8]  }
  0x26   :  { %s19_s22 = sshll.u32 %s953_s20, 4  ;;  %s44_s24 = sshll.u32 %s954_s23, 4  ;;  %s20_s22 = int_to_ptr.vmem [resolvable:$true] %s19_s22  ;;  %s45_s24 = int_to_ptr.vmem [resolvable:$true] %s44_s24 }
  0x27   :  { %s851_s27 = scalar_lea.hbm %s1081_s0, 256 }
  0x28   :  { %p852_p2 = scmp.ne.s32.totalorder %s1081_s0, %s851_s27  ;;  %p855_p3 = scmp.lt.u32.totalorder %s851_s27, %s1081_s0 }
  0x2a   :  { %p857_p4 = pnand %p855_p3, %p852_p2 }
  0x2c   :  { %860 = shalt.err (!%p857_p4)
}
  0x2d   :  { %s861_s3 = scalar_lea.vmem %s20_s22, 256  ;;  %p866_p6 = scmp.lt.s32.totalorder %s20_s22, %s20_s22 }
  0x2e   :  { %p862_p5 = scmp.ne.s32.totalorder %s20_s22, %s861_s3  ;;  %p867_p7 = scmp.lt.s32.totalorder %s861_s3, %s861_s3 }
  0x30   :  { %p868_p8 = por %p867_p7, %p866_p6 }
  0x32   :  { %p869_p9 = pnand %p868_p8, %p862_p5 }
  0x34   :  { %872 = shalt.err (!%p869_p9)
}
  0x35   :  { %25 = dma.hbm_to_vmem [thread:$0]  %s1081_s0, 256, %s20_s22, [#allocation4], %s949_s30, %s949_s30, %s950_s6  }
  0x36   :  { %s873_s12 = scalar_lea.hbm %s1083_s2, 64 }
  0x37   :  { %p874_p10 = scmp.ne.s32.totalorder %s1083_s2, %s873_s12  ;;  %p877_p11 = scmp.lt.u32.totalorder %s873_s12, %s1083_s2 }
  0x39   :  { %p879_p12 = pnand %p877_p11, %p874_p10 }
  0x3b   :  { %882 = shalt.err (!%p879_p12)
}
  0x3c   :  { %s883_s1 = scalar_lea.vmem %s45_s24, 64  ;;  %p888_p0 = scmp.lt.s32.totalorder %s45_s24, %s45_s24 }
  0x3d   :  { %p884_p13 = scmp.ne.s32.totalorder %s45_s24, %s883_s1  ;;  %p889_p1 = scmp.lt.s32.totalorder %s883_s1, %s883_s1 }
  0x3f   :  { %p890_p2 = por %p889_p1, %p888_p0 }
  0x41   :  { %p891_p3 = pnand %p890_p2, %p884_p13 }
  0x43   :  { %894 = shalt.err (!%p891_p3)
}
  0x44   :  { %47 = dma.hbm_to_vmem [thread:$0]  %s1083_s2, 64, %s45_s24, [#allocation7]  }
  0x45   :  { %s955_s18 = smov [#allocation11]   ;;  %s895_s23 = scalar_lea.hbm %s1085_s4, 16 }
  0x46   :  { %s66_s19 = sshll.u32 %s955_s18, 4  ;;  %p896_p4 = scmp.ne.s32.totalorder %s1085_s4, %s895_s23  ;;  %s67_s19 = int_to_ptr.vmem [resolvable:$true] %s66_s19 }
  0x47   :  { %p899_p5 = scmp.lt.u32.totalorder %s895_s23, %s1085_s4 }
  0x49   :  { %p901_p6 = pnand %p899_p5, %p896_p4 }
  0x4b   :  { %904 = shalt.err (!%p901_p6)
}
  0x4c   :  { %s905_s29 = scalar_lea.vmem %s67_s19, 16  ;;  %s909_s2 = scalar_lea.vmem %s67_s19, 32 }
  0x4d   :  { %p906_p7 = scmp.ne.s32.totalorder %s67_s19, %s905_s29  ;;  %p910_p8 = scmp.lt.s32.totalorder %s67_s19, %s67_s19 }
  0x4e   :  { %p911_p9 = scmp.lt.s32.totalorder %s909_s2, %s905_s29 }
  0x50   :  { %p912_p10 = por %p911_p9, %p910_p8 }
  0x52   :  { %p913_p11 = pnand %p912_p10, %p906_p7 }
  0x54   :  { %916 = shalt.err (!%p913_p11)
}
  0x55   :  { %69 = dma.hbm_to_vmem [thread:$0]  %s1085_s4, 16, %s67_s19, [#allocation10]  }
  0x56   :  { %939 = dma.done.wait [#allocation4], 256  }
  0x57   :  { %940 = vsyncadd [#allocation4], 4294967040 }
  0x58   :  { %941 = dma.done.wait [#allocation7], 8256  }
  0x59   :  { %942 = vsyncadd [#allocation7], 4294959040 }
  0x5a   :  { %943 = dma.done.wait [#allocation10], 8208  }
  0x5b   :  { %944 = vsyncadd [#allocation10], 4294959088  ;;  %v109_v0 = vld [vmem:[#allocation6 + $0x80] sm:$0xff]  ;;  %v110_v1 = vld [vmem:[#allocation6 + $0x88] sm:$0xff]  ;;  %s956_s4 = smov [#allocation12]  }
  0x5c   :  { %v141_v2 = vld [vmem:[#allocation6 + $0x180] sm:$0xff]  ;;  %v669_v3 = vpack.c.bf16 %v110_v1, %v109_v0  ;;  %v142_v4 = vld [vmem:[#allocation6 + $0x188] sm:$0xff]  ;;  %v111_v11 = vld [vmem:[#allocation6 + $0x90] sm:$0xff]  ;;  %s582_s8 = sshll.u32 %s956_s4, 4  ;;  %s583_s8 = int_to_ptr.vmem [resolvable:$true] %s582_s8 }
  0x5d   :  { %v93_v5 = vld [vmem:[#allocation6] sm:$0xff]  ;;  %v94_v6 = vld [vmem:[#allocation6 + $0x8] sm:$0xff]  ;;  %v701_v7 = vpack.c.bf16 %v142_v4, %v141_v2  ;;  %v112_v13 = vld [vmem:[#allocation6 + $0x98] sm:$0xff]  ;;  %s917_s3 = scalar_lea.vmem %s583_s8, 256  ;;  %p922_p13 = scmp.lt.s32.totalorder %s583_s8, %s583_s8 }
  0x5e   :  { %v671_v8 = vpack.c.bf16 %v94_v6, %v93_v5  ;;  %v125_v9 = vld [vmem:[#allocation6 + $0x100] sm:$0xff]  ;;  %v126_v10 = vld [vmem:[#allocation6 + $0x108] sm:$0xff]  ;;  %670 = vmatprep.subr.bf16.mxu0 %v669_v3  ;;  %v143_v14 = vld [vmem:[#allocation6 + $0x190] sm:$0xff]  ;;  %v673_v16 = vpack.c.bf16 %v112_v13, %v111_v11  ;;  %p918_p12 = scmp.ne.s32.totalorder %s583_s8, %s917_s3  ;;  %p923_p0 = scmp.lt.s32.totalorder %s917_s3, %s917_s3 }
  0x5f   :  { %v703_v12 = vpack.c.bf16 %v126_v10, %v125_v9  ;;  %v144_v15 = vld [vmem:[#allocation6 + $0x198] sm:$0xff]  ;;  %702 = vmatprep.subr.bf16.mxu1 %v701_v7  ;;  %v95_v18 = vld [vmem:[#allocation6 + $0x10] sm:$0xff]  ;;  %v113_v22 = vld [vmem:[#allocation6 + $0xa0] sm:$0xff] }
  0x60   :  { %672 = vmatpush3.bf16.xpose.msra.mxu0 %v671_v8  ;;  %v705_v17 = vpack.c.bf16 %v144_v15, %v143_v14  ;;  %v96_v19 = vld [vmem:[#allocation6 + $0x18] sm:$0xff]  ;;  %v127_v20 = vld [vmem:[#allocation6 + $0x110] sm:$0xff]  ;;  %v114_v23 = vld [vmem:[#allocation6 + $0xa8] sm:$0xff]  ;;  %p924_p1 = por %p923_p0, %p922_p13 }
  0x61   :  { %704 = vmatpush3.bf16.xpose.msra.mxu1 %v703_v12  ;;  %674 = vmatprep.subr.bf16.mxu0 %v673_v16  ;;  %v128_v21 = vld [vmem:[#allocation6 + $0x118] sm:$0xff]  ;;  %v145_v24 = vld [vmem:[#allocation6 + $0x1a0] sm:$0xff]  ;;  %v146_v25 = vld [vmem:[#allocation6 + $0x1a8] sm:$0xff]  ;;  %v675_v26 = vpack.c.bf16 %v96_v19, %v95_v18  ;;  %v677_v28 = vpack.c.bf16 %v114_v23, %v113_v22 }
  0x62   :  { %706 = vmatprep.subr.bf16.mxu1 %v705_v17  ;;  %v707_v27 = vpack.c.bf16 %v128_v21, %v127_v20  ;;  %v709_v29 = vpack.c.bf16 %v146_v25, %v145_v24  ;;  %v97_v30 = vld [vmem:[#allocation6 + $0x20] sm:$0xff]  ;;  %v98_v31 = vld [vmem:[#allocation6 + $0x28] sm:$0xff]  ;;  %v115_v34 = vld [vmem:[#allocation6 + $0xb0] sm:$0xff]  ;;  %p925_p2 = pnand %p924_p1, %p918_p12 }
  0x63   :  { %v129_v32 = vld [vmem:[#allocation6 + $0x120] sm:$0xff]  ;;  %v130_v33 = vld [vmem:[#allocation6 + $0x128] sm:$0xff]  ;;  %v116_v35 = vld [vmem:[#allocation6 + $0xb8] sm:$0xff]  ;;  %v679_v38 = vpack.c.bf16 %v98_v31, %v97_v30 }
  0x64   :  { %v147_v36 = vld [vmem:[#allocation6 + $0x1b0] sm:$0xff]  ;;  %v148_v37 = vld [vmem:[#allocation6 + $0x1b8] sm:$0xff]  ;;  %v711_v39 = vpack.c.bf16 %v130_v33, %v129_v32  ;;  %v681_v40 = vpack.c.bf16 %v116_v35, %v115_v34  ;;  %v117_v47 = vld [vmem:[#allocation6 + $0xc0] sm:$0xff] }
  0x65   :  { %v713_v41 = vpack.c.bf16 %v148_v37, %v147_v36  ;;  %v99_v42 = vld [vmem:[#allocation6 + $0x30] sm:$0xff]  ;;  %v100_v43 = vld [vmem:[#allocation6 + $0x38] sm:$0xff]  ;;  %v118_v48 = vld [vmem:[#allocation6 + $0xc8] sm:$0xff] }
  0x66   :  { %v131_v44 = vld [vmem:[#allocation6 + $0x130] sm:$0xff]  ;;  %v132_v46 = vld [vmem:[#allocation6 + $0x138] sm:$0xff]  ;;  %v149_v49 = vld [vmem:[#allocation6 + $0x1c0] sm:$0xff]  ;;  %v683_v51 = vpack.c.bf16 %v100_v43, %v99_v42  ;;  %v685_v53 = vpack.c.bf16 %v118_v48, %v117_v47 }
  0x67   :  { %v1060_v45 = vld [vmem:[#allocation3] sm:$0xff]  ;;  %v150_v50 = vld [vmem:[#allocation6 + $0x1c8] sm:$0xff]  ;;  %v715_v52 = vpack.c.bf16 %v132_v46, %v131_v44  ;;  %v101_v55 = vld [vmem:[#allocation6 + $0x40] sm:$0xff] }
  0x68   :  { %676 = vmatpush3.bf16.xpose.msra.mxu0 %v675_v26  ;;  %629 = vmatprep.mubr.f32.mxu0 %v1060_v45  ;;  %v717_v54 = vpack.c.bf16 %v150_v50, %v149_v49  ;;  %v102_v56 = vld [vmem:[#allocation6 + $0x48] sm:$0xff]  ;;  %v133_v57 = vld [vmem:[#allocation6 + $0x140] sm:$0xff]  ;;  %v119_v59 = vld [vmem:[#allocation6 + $0xd0] sm:$0xff] }
  0x69   :  { %708 = vmatpush3.bf16.xpose.msra.mxu1 %v707_v27  ;;  %678 = vmatprep.subr.bf16.mxu0 %v677_v28  ;;  %v134_v58 = vld [vmem:[#allocation6 + $0x148] sm:$0xff]  ;;  %v120_v60 = vld [vmem:[#allocation6 + $0xd8] sm:$0xff]  ;;  %v151_v61 = vld [vmem:[#allocation6 + $0x1d0] sm:$0xff]  ;;  %v687_v63 = vpack.c.bf16 %v102_v56, %v101_v55 }
  0x6a   :  { %710 = vmatprep.subr.bf16.mxu1 %v709_v29  ;;  %665 = vmatprep.mubr.f32.mxu1 %v1060_v45  ;;  %v152_v62 = vld [vmem:[#allocation6 + $0x1d8] sm:$0xff]  ;;  %v719_v0 = vpack.c.bf16 %v134_v58, %v133_v57  ;;  %v689_v1 = vpack.c.bf16 %v120_v60, %v119_v59  ;;  %v103_v3 = vld [vmem:[#allocation6 + $0x50] sm:$0xff]  ;;  %v121_v7 = vld [vmem:[#allocation6 + $0xe0] sm:$0xff] }
  0x6b   :  { %v721_v2 = vpack.c.bf16 %v152_v62, %v151_v61  ;;  %v104_v4 = vld [vmem:[#allocation6 + $0x58] sm:$0xff]  ;;  %v135_v5 = vld [vmem:[#allocation6 + $0x150] sm:$0xff]  ;;  %v122_v8 = vld [vmem:[#allocation6 + $0xe8] sm:$0xff] }
  0x6c   :  { %v136_v6 = vld [vmem:[#allocation6 + $0x158] sm:$0xff]  ;;  %v153_v9 = vld [vmem:[#allocation6 + $0x1e0] sm:$0xff]  ;;  %v154_v10 = vld [vmem:[#allocation6 + $0x1e8] sm:$0xff]  ;;  %v691_v11 = vpack.c.bf16 %v104_v4, %v103_v3  ;;  %v693_v13 = vpack.c.bf16 %v122_v8, %v121_v7 }
  0x6d   :  { %v723_v12 = vpack.c.bf16 %v136_v6, %v135_v5  ;;  %v725_v14 = vpack.c.bf16 %v154_v10, %v153_v9  ;;  %v105_v15 = vld [vmem:[#allocation6 + $0x60] sm:$0xff]  ;;  %v106_v16 = vld [vmem:[#allocation6 + $0x68] sm:$0xff]  ;;  %v123_v19 = vld [vmem:[#allocation6 + $0xf0] sm:$0xff] }
  0x6e   :  { %v137_v17 = vld [vmem:[#allocation6 + $0x160] sm:$0xff]  ;;  %v138_v18 = vld [vmem:[#allocation6 + $0x168] sm:$0xff]  ;;  %v124_v20 = vld [vmem:[#allocation6 + $0xf8] sm:$0xff]  ;;  %v695_v23 = vpack.c.bf16 %v106_v16, %v105_v15 }
  0x6f   :  { %v155_v21 = vld [vmem:[#allocation6 + $0x1f0] sm:$0xff]  ;;  %v156_v22 = vld [vmem:[#allocation6 + $0x1f8] sm:$0xff]  ;;  %v727_v24 = vpack.c.bf16 %v138_v18, %v137_v17  ;;  %v697_v25 = vpack.c.bf16 %v124_v20, %v123_v19 }
  0x70   :  { %680 = vmatpush3.bf16.xpose.msra.mxu0 %v679_v38  ;;  %v729_v26 = vpack.c.bf16 %v156_v22, %v155_v21  ;;  %v107_v27 = vld [vmem:[#allocation6 + $0x70] sm:$0xff]  ;;  %v108_v28 = vld [vmem:[#allocation6 + $0x78] sm:$0xff] }
  0x71   :  { %712 = vmatpush3.bf16.xpose.msra.mxu1 %v711_v39  ;;  %682 = vmatprep.subr.bf16.mxu0 %v681_v40  ;;  %v139_v29 = vld [vmem:[#allocation6 + $0x170] sm:$0xff]  ;;  %v140_v30 = vld [vmem:[#allocation6 + $0x178] sm:$0xff]  ;;  %v699_v35 = vpack.c.bf16 %v108_v28, %v107_v27  ;;  %v343_v39 = vld [vmem:[#allocation9] sm:$0xff] }
  0x72   :  { %714 = vmatprep.subr.bf16.mxu1 %v713_v41  ;;  %v344_v31 = vld [vmem:[#allocation9 + $0x8] sm:$0xff]  ;;  %v346_v33 = vld [vmem:[#allocation9 + $0x18] sm:$0xff]  ;;  %v731_v36 = vpack.c.bf16 %v140_v30, %v139_v29  ;;  %v347_v40 = vld [vmem:[#allocation9 + $0x20] sm:$0xff] }
  0x73   :  { %v348_v32 = vld [vmem:[#allocation9 + $0x28] sm:$0xff]  ;;  %v350_v34 = vld [vmem:[#allocation9 + $0x38] sm:$0xff]  ;;  %v345_v41 = vld [vmem:[#allocation9 + $0x10] sm:$0xff]  ;;  %v735_v49 = vpack.c.bf16 %v347_v40, %v343_v39 }
  0x74   :  { %v733_v37 = vpack.c.bf16 %v348_v32, %v344_v31  ;;  %v765_v38 = vpack.c.bf16 %v350_v34, %v346_v33  ;;  %v349_v42 = vld [vmem:[#allocation9 + $0x30] sm:$0xff]  ;;  %v352_v43 = vld [vmem:[#allocation9 + $0x48] sm:$0xff]  ;;  %v354_v46 = vld [vmem:[#allocation9 + $0x58] sm:$0xff] }
  0x75   :  { %v356_v44 = vld [vmem:[#allocation9 + $0x68] sm:$0xff]  ;;  %v358_v47 = vld [vmem:[#allocation9 + $0x78] sm:$0xff]  ;;  %v767_v50 = vpack.c.bf16 %v349_v42, %v345_v41  ;;  %v353_v55 = vld [vmem:[#allocation9 + $0x50] sm:$0xff] }
  0x76   :  { %v92_v48 = vld [vmem:[#allocation3 + $0x8] sm:$0xff]  ;;  %v360_v57 = vld [vmem:[#allocation9 + $0x88] sm:$0xff] }
  0x77   :  { %v357_v56 = vld [vmem:[#allocation9 + $0x70] sm:$0xff]  ;;  %v364_v58 = vld [vmem:[#allocation9 + $0xa8] sm:$0xff]  ;;  %v362_v59 = vld [vmem:[#allocation9 + $0x98] sm:$0xff] }
  0x78   :  { %684 = vmatpush3.bf16.xpose.msra.mxu0 %v683_v51  ;;  %v737_v51 = vpack.c.bf16 %v356_v44, %v352_v43  ;;  %v366_v60 = vld [vmem:[#allocation9 + $0xb8] sm:$0xff]  ;;  %v771_v62 = vpack.c.bf16 %v357_v56, %v353_v55  ;;  %v365_v3 = vld [vmem:[#allocation9 + $0xb0] sm:$0xff]  ;;  %v368_v4 = vld [vmem:[#allocation9 + $0xc8] sm:$0xff] }
  0x79   :  { %716 = vmatpush3.bf16.xpose.msra.mxu1 %v715_v52  ;;  %686 = vmatprep.subr.bf16.mxu0 %v685_v53  ;;  %v769_v52 = vpack.c.bf16 %v358_v47, %v354_v46  ;;  %v351_v53 = vld [vmem:[#allocation9 + $0x40] sm:$0xff]  ;;  %v372_v5 = vld [vmem:[#allocation9 + $0xe8] sm:$0xff]  ;;  %v370_v6 = vld [vmem:[#allocation9 + $0xd8] sm:$0xff] }
  0x7a   :  { %718 = vmatprep.subr.bf16.mxu1 %v717_v54  ;;  %v355_v54 = vld [vmem:[#allocation9 + $0x60] sm:$0xff]  ;;  %v374_v7 = vld [vmem:[#allocation9 + $0xf8] sm:$0xff]  ;;  %v745_v10 = vpack.c.bf16 %v372_v5, %v368_v4  ;;  %v373_v15 = vld [vmem:[#allocation9 + $0xf0] sm:$0xff] }
  0x7b   :  { %v739_v61 = vpack.c.bf16 %v355_v54, %v351_v53  ;;  %v376_v16 = vld [vmem:[#allocation9 + $0x108] sm:$0xff]  ;;  %v378_v18 = vld [vmem:[#allocation9 + $0x118] sm:$0xff]  ;;  %v381_v27 = vld [vmem:[#allocation9 + $0x130] sm:$0xff] }
  0x7c   :  { %v380_v17 = vld [vmem:[#allocation9 + $0x128] sm:$0xff]  ;;  %v382_v19 = vld [vmem:[#allocation9 + $0x138] sm:$0xff]  ;;  %v389_v39 = vld [vmem:[#allocation9 + $0x170] sm:$0xff] }
  0x7d   :  { %v749_v22 = vpack.c.bf16 %v380_v17, %v376_v16  ;;  %v384_v28 = vld [vmem:[#allocation9 + $0x148] sm:$0xff]  ;;  %v386_v30 = vld [vmem:[#allocation9 + $0x158] sm:$0xff] }
  0x7e   :  { %v388_v29 = vld [vmem:[#allocation9 + $0x168] sm:$0xff]  ;;  %v390_v31 = vld [vmem:[#allocation9 + $0x178] sm:$0xff] }
  0x7f   :  { %v753_v34 = vpack.c.bf16 %v388_v29, %v384_v28  ;;  %v392_v40 = vld [vmem:[#allocation9 + $0x188] sm:$0xff]  ;;  %v394_v42 = vld [vmem:[#allocation9 + $0x198] sm:$0xff] }
  0x80   :  { %688 = vmatpush3.bf16.xpose.msra.mxu0 %v687_v63  ;;  %v741_v63 = vpack.c.bf16 %v364_v58, %v360_v57  ;;  %v396_v41 = vld [vmem:[#allocation9 + $0x1a8] sm:$0xff]  ;;  %v398_v43 = vld [vmem:[#allocation9 + $0x1b8] sm:$0xff] }
  0x81   :  { %720 = vmatpush3.bf16.xpose.msra.mxu1 %v719_v0  ;;  %690 = vmatprep.subr.bf16.mxu0 %v689_v1  ;;  %v359_v0 = vld [vmem:[#allocation9 + $0x80] sm:$0xff]  ;;  %v757_v47 = vpack.c.bf16 %v396_v41, %v392_v40  ;;  %v400_v53 = vld [vmem:[#allocation9 + $0x1c8] sm:$0xff]  ;;  %v402_v55 = vld [vmem:[#allocation9 + $0x1d8] sm:$0xff] }
  0x82   :  { %722 = vmatprep.subr.bf16.mxu1 %v721_v2  ;;  %v363_v1 = vld [vmem:[#allocation9 + $0xa0] sm:$0xff]  ;;  %v361_v2 = vld [vmem:[#allocation9 + $0x90] sm:$0xff]  ;;  %v404_v54 = vld [vmem:[#allocation9 + $0x1e8] sm:$0xff] }
  0x83   :  { %v743_v8 = vpack.c.bf16 %v363_v1, %v359_v0  ;;  %v775_v9 = vpack.c.bf16 %v365_v3, %v361_v2  ;;  %v406_v56 = vld [vmem:[#allocation9 + $0x1f8] sm:$0xff]  ;;  %v405_v0 = vld [vmem:[#allocation9 + $0x1f0] sm:$0xff]  ;;  %v159_v2 = vlaneseq }
  0x84   :  { %v157_v5 = vld [vmem:[#allocation8] sm:$0xf] }
  0x85   :  { %v160_v3 = vshrl.u32 %v159_v2, 7 }
  0x87   :  { %v161_v4 = vsub.s32 0, %v160_v3 }
  0x88   :  { %692 = vmatpush3.bf16.xpose.msra.mxu0 %v691_v11  ;;  %v777_v11 = vpack.c.bf16 %v374_v7, %v370_v6  ;;  %v169_v6 = vsub.s32 2, %v160_v3  ;;  %v165_v7 = vsub.s32 1, %v160_v3 }
  0x89   :  { %724 = vmatpush3.bf16.xpose.msra.mxu1 %v723_v12  ;;  %694 = vmatprep.subr.bf16.mxu0 %v693_v13  ;;  %v367_v12 = vld [vmem:[#allocation9 + $0xc0] sm:$0xff] }
  0x8a   :  { %726 = vmatprep.subr.bf16.mxu1 %v725_v14  ;;  %v371_v13 = vld [vmem:[#allocation9 + $0xe0] sm:$0xff]  ;;  %v369_v14 = vld [vmem:[#allocation9 + $0xd0] sm:$0xff] }
  0x8b   :  { %v747_v20 = vpack.c.bf16 %v371_v13, %v367_v12  ;;  %v779_v21 = vpack.c.bf16 %v373_v15, %v369_v14 }
  0x90   :  { %696 = vmatpush3.bf16.xpose.msra.mxu0 %v695_v23  ;;  %v781_v23 = vpack.c.bf16 %v382_v19, %v378_v18 }
  0x91   :  { %728 = vmatpush3.bf16.xpose.msra.mxu1 %v727_v24  ;;  %698 = vmatprep.subr.bf16.mxu0 %v697_v25  ;;  %v375_v24 = vld [vmem:[#allocation9 + $0x100] sm:$0xff] }
  0x92   :  { %730 = vmatprep.subr.bf16.mxu1 %v729_v26  ;;  %v379_v25 = vld [vmem:[#allocation9 + $0x120] sm:$0xff]  ;;  %v377_v26 = vld [vmem:[#allocation9 + $0x110] sm:$0xff] }
  0x93   :  { %v751_v32 = vpack.c.bf16 %v379_v25, %v375_v24  ;;  %v783_v33 = vpack.c.bf16 %v381_v27, %v377_v26 }
  0x98   :  { %700 = vmatpush3.bf16.xpose.msra.mxu0 %v699_v35  ;;  %v785_v35 = vpack.c.bf16 %v390_v31, %v386_v30 }
  0x99   :  { %732 = vmatpush3.bf16.xpose.msra.mxu1 %v731_v36  ;;  %734 = vmatprep.subr.bf16.mxu0 %v733_v37  ;;  %v383_v36 = vld [vmem:[#allocation9 + $0x140] sm:$0xff] }
  0x9a   :  { %766 = vmatprep.subr.bf16.mxu1 %v765_v38  ;;  %v387_v37 = vld [vmem:[#allocation9 + $0x160] sm:$0xff]  ;;  %v385_v38 = vld [vmem:[#allocation9 + $0x150] sm:$0xff] }
  0x9b   :  { %v755_v44 = vpack.c.bf16 %v387_v37, %v383_v36  ;;  %v787_v46 = vpack.c.bf16 %v389_v39, %v385_v38  ;;  %v596_v39 = vld [vmem:[#allocation11] ss:$0 sm:$0xff] }
  0x9f   :  { %630 = vmatmul.mubr.f32.vlgmr.msra.gmra.mrb[0].mxu0 %v1060_v45 }
  0xa0   :  { %666 = vmatmul.mubr.f32.vlgmr.msra.gmra.mrb[0].mxu1 %v1060_v45  ;;  %631 = vmatprep.mubr.f32.mxu0 %v92_v48  ;;  %v773_v45 = vpack.c.bf16 %v366_v60, %v362_v59  ;;  %v761_v59 = vpack.c.bf16 %v404_v54, %v400_v53  ;;  %v793_v60 = vpack.c.bf16 %v406_v56, %v402_v55 }
  0xa1   :  { %667 = vmatprep.mubr.f32.mxu1 %v92_v48  ;;  %736 = vmatpush1.bf16.xpose.msra.mxu0 %v735_v49  ;;  %v391_v49 = vld [vmem:[#allocation9 + $0x180] sm:$0xff] }
  0xa2   :  { %768 = vmatpush1.bf16.xpose.msra.mxu1 %v767_v50  ;;  %738 = vmatprep.subr.bf16.mxu0 %v737_v51  ;;  %v395_v50 = vld [vmem:[#allocation9 + $0x1a0] sm:$0xff]  ;;  %v393_v51 = vld [vmem:[#allocation9 + $0x190] sm:$0xff] }
  0xa3   :  { %632 = vmatmul.mubr.f32.gmra.mrb[2].mxu0 %v92_v48  ;;  %770 = vmatprep.subr.bf16.mxu1 %v769_v52  ;;  %v397_v52 = vld [vmem:[#allocation9 + $0x1b0] sm:$0xff]  ;;  %v759_v57 = vpack.c.bf16 %v395_v50, %v391_v49 }
  0xa4   :  { %668 = vmatmul.mubr.f32.gmra.mrb[2].mxu1 %v92_v48  ;;  %v789_v48 = vpack.c.bf16 %v398_v43, %v394_v42  ;;  %v791_v58 = vpack.c.bf16 %v397_v52, %v393_v51 }
  0xa9   :  { %740 = vmatpush1.bf16.xpose.msra.mxu0 %v739_v61  ;;  %v399_v61 = vld [vmem:[#allocation9 + $0x1c0] sm:$0xff] }
  0xaa   :  { %772 = vmatpush1.bf16.xpose.msra.mxu1 %v771_v62  ;;  %742 = vmatprep.subr.bf16.mxu0 %v741_v63  ;;  %v403_v62 = vld [vmem:[#allocation9 + $0x1e0] sm:$0xff]  ;;  %v401_v63 = vld [vmem:[#allocation9 + $0x1d0] sm:$0xff] }
  0xab   :  { %774 = vmatprep.subr.bf16.mxu1 %v773_v45  ;;  %v763_v45 = vpack.c.bf16 %v403_v62, %v399_v61  ;;  %v795_v1 = vpack.c.bf16 %v405_v0, %v401_v63 }
  0xb1   :  { %744 = vmatpush1.bf16.xpose.msra.mxu0 %v743_v8  ;;  %v173_v8 = vsub.s32 3, %v160_v3 }
  0xb2   :  { %776 = vmatpush1.bf16.xpose.msra.mxu1 %v775_v9  ;;  %746 = vmatprep.subr.bf16.mxu0 %v745_v10  ;;  %v162_v9 = vrot.slane %v157_v5, %v161_v4  ;;  %v170_v10 = vrot.slane %v157_v5, %v169_v6 }
  0xb3   :  { %778 = vmatprep.subr.bf16.mxu1 %v777_v11  ;;  %v166_v11 = vrot.slane %v157_v5, %v165_v7  ;;  %v174_v12 = vrot.slane %v157_v5, %v173_v8 }
  0xb9   :  { %748 = vmatpush1.bf16.xpose.msra.mxu0 %v747_v20 }
  0xba   :  { %780 = vmatpush1.bf16.xpose.msra.mxu1 %v779_v21  ;;  %750 = vmatprep.subr.bf16.mxu0 %v749_v22 }
  0xbb   :  { %782 = vmatprep.subr.bf16.mxu1 %v781_v23 }
  0xc1   :  { %752 = vmatpush1.bf16.xpose.msra.mxu0 %v751_v32 }
  0xc2   :  { %784 = vmatpush1.bf16.xpose.msra.mxu1 %v783_v33  ;;  %754 = vmatprep.subr.bf16.mxu0 %v753_v34 }
  0xc3   :  { %786 = vmatprep.subr.bf16.mxu1 %v785_v35 }
  0xc9   :  { %756 = vmatpush1.bf16.xpose.msra.mxu0 %v755_v44 }
  0xca   :  { %788 = vmatpush1.bf16.xpose.msra.mxu1 %v787_v46  ;;  %758 = vmatprep.subr.bf16.mxu0 %v757_v47 }
  0xcb   :  { %790 = vmatprep.subr.bf16.mxu1 %v789_v48 }
  0xd1   :  { %760 = vmatpush1.bf16.xpose.msra.mxu0 %v759_v57 }
  0xd2   :  { %792 = vmatpush1.bf16.xpose.msra.mxu1 %v791_v58  ;;  %762 = vmatprep.subr.bf16.mxu0 %v761_v59 }
  0xd3   :  { %794 = vmatprep.subr.bf16.mxu1 %v793_v60 }
  0xd9   :  { %764 = vmatpush1.bf16.xpose.msra.mxu0 %v763_v45 }
  0xda   :  { %796 = vmatpush1.bf16.xpose.msra.mxu1 %v795_v1 }
 0x172   :  { %v245_v13 = vpop.f32.mrb[0].mxu0 }
 0x173   :  { %v246_v14 = vadd.f32 %v245_v13, %v162_v9  ;;  %v322_v15 = vpop.f32.mrb[0].mxu1  ;;  %v247_v16 = vpop.f32.mrb[1].mxu0 }
 0x174   :  { %v323_v17 = vadd.f32 %v322_v15, %v170_v10  ;;  %v248_v18 = vadd.f32 %v247_v16, %v166_v11  ;;  %v324_v19 = vpop.f32.mrb[1].mxu1 }
 0x175   :  { %v325_v20 = vadd.f32 %v324_v19, %v174_v12  ;;  %v333_v23 = vmax.f32 %v246_v14, 0.0 }
 0x176   :  { %v334_v21 = vmax.f32 %v248_v18, 0.0  ;;  %v251_v22 = vpop.f32.mrb[2].mxu0  ;;  %v335_v28 = vmax.f32 %v323_v17, 0.0 }
 0x177   :  { %v336_v24 = vmax.f32 %v325_v20, 0.0  ;;  %v252_v25 = vadd.f32 %v251_v22, %v162_v9  ;;  %v328_v26 = vpop.f32.mrb[2].mxu1  ;;  %v253_v27 = vpop.f32.mrb[3].mxu0 }
 0x178   :  { %v329_v29 = vadd.f32 %v328_v26, %v170_v10  ;;  %v254_v30 = vadd.f32 %v253_v27, %v166_v11  ;;  %v330_v31 = vpop.f32.mrb[3].mxu1  ;;  %471 = vmatprep.mubr.f32.mxu0 %v334_v21 }
 0x179   :  { %v331_v32 = vadd.f32 %v330_v31, %v174_v12  ;;  %546 = vmatprep.mubr.f32.mxu1 %v336_v24  ;;  %472 = vmatmul.mubr.f32.vlgmr.msra.gmra.mrb[4].mxu0 %v333_v23  ;;  %v337_v34 = vmax.f32 %v252_v25, 0.0 }
 0x17a   :  { %v338_v33 = vmax.f32 %v254_v30, 0.0  ;;  %547 = vmatmul.mubr.f32.vlgmr.msra.gmra.mrb[4].mxu1 %v335_v28  ;;  %v339_v36 = vmax.f32 %v329_v29, 0.0 }
 0x17b   :  { %v340_v35 = vmax.f32 %v331_v32, 0.0 }
 0x17c   :  { %476 = vmatprep.mubr.f32.mxu0 %v338_v33 }
 0x17d   :  { %551 = vmatprep.mubr.f32.mxu1 %v340_v35  ;;  %477 = vmatmul.mubr.f32.gmra.mrb[6].mxu0 %v337_v34 }
 0x17e   :  { %552 = vmatmul.mubr.f32.gmra.mrb[6].mxu1 %v339_v36 }
 0x24c   :  { %v473_v37 = vpop.f32.mrb[4].mxu0 }
 0x24d   :  { %v548_v38 = vpop.f32.mrb[4].mxu1  ;;  %v475_v40 = vpop.f32.mrb[5].mxu0 }
 0x24e   :  { %v549_v41 = vadd.f32 %v548_v38, %v473_v37  ;;  %v550_v42 = vpop.f32.mrb[5].mxu1 }
 0x250   :  { %v573_v43 = vadd.f32 %v596_v39, %v549_v41  ;;  %v478_v44 = vpop.f32.mrb[6].mxu0 }
 0x251   :  { %v553_v46 = vpop.f32.mrb[6].mxu1  ;;  %v480_v47 = vpop.f32.mrb[7].mxu0 }
 0x252   :  { %575 = vst [vmem:[#allocation12] sm:$0xff] %v573_v43  ;;  %v554_v48 = vadd.f32 %v553_v46, %v478_v44  ;;  %v555_v49 = vpop.f32.mrb[7].mxu1 }
 0x254   :  { %v574_v50 = vadd.f32 %v596_v39, %v554_v48 }
 0x256   :  { %576 = vst [vmem:[#allocation12 + $0x8] sm:$0xff] %v574_v50 }
 0x257   :  { %928 = shalt.err (!%p925_p2)
}
 0x258   :  { %s929_s10 = scalar_lea.hbm %s1086_s5, 256 }
 0x259   :  { %p930_p3 = scmp.ne.s32.totalorder %s1086_s5, %s929_s10  ;;  %p933_p4 = scmp.lt.u32.totalorder %s929_s10, %s1086_s5 }
 0x25b   :  { %p935_p5 = pnand %p933_p4, %p930_p3 }
 0x25d   :  { %938 = shalt.err (!%p935_p5)
}
 0x25e   :  { %588 = dma.vmem_to_hbm [thread:$0]  %s583_s8, 256, %s1086_s5, [#allocation5], %s949_s30, %s949_s30, %s950_s6  }
 0x25f   :  { %945 = dma.done.wait [#allocation5], 256  }
 0x260   :  { %946 = vsyncadd [#allocation5], 4294967040 }
 0x261   :  { %592 = vsyncpa [#allocation4], 1 }
 0x262   :  { %593 = vsyncpa [#allocation7], 1 }
 0x263   :  { %594 = vsyncpa [#allocation10], 1 }
 0x264   :  { %595 = vsyncpa [#allocation5], 1 }

</bundles_post_ra>
